<compile_context>
chip_gen: v7x
topology: tpu7x:2x2x1
jax: 0.10.0
libtpu: 0.0.40
codegen_flags: <defaults>
</compile_context>

<pallas_src>
import jax
import jax.numpy as jnp
from jax.experimental import pallas as pl
from jax.experimental.pallas import tpu as pltpu

EPS = 1e-3              # matches CharbonnierLoss.__init__ (hard-coded 0.001)
LANES = 128
TILE_M_MAX = 4096       # 4096 * 128 * 4 B = 2 MiB per f32 input block
NUM_PARTIALS = 2        # megacore-friendly split; used only when it divides num_blocks


def _pick_acc_rows(tile_m):
    """Largest accumulator row count in {64,32,16,8} dividing tile_m (>=8 vregs)."""
    for d in (64, 32, 16, 8):
        if tile_m % d == 0:
            return d
    return tile_m        # tiny single-block case (tile_m == m, m not multiple of 8)


def _make_kernel(tile_m, acc_rows, steps, n_valid, needs_mask):
    """Kernel body with statically-known tiling parameters (all Python scalars)."""
    eps2 = float(EPS) * float(EPS)          # Python float -> literal, not a captured const
    block_elems = tile_m * LANES
    chunks = tile_m // acc_rows

    def kernel(x_ref, y_ref, out_ref, acc_ref):
        p = pl.program_id(0)
        s = pl.program_id(1)

        @pl.when(s == 0)
        def _():
            acc_ref[...] = jnp.zeros_like(acc_ref)

        d = x_ref[...].astype(jnp.float32) - y_ref[...].astype(jnp.float32)
        val = jnp.sqrt(d * d + eps2)

        if not needs_mask:
            # Fast path: every element of every block is valid. Pure VPU adds
            # into a small (acc_rows, 128) accumulator.
            acc_ref[...] += val.reshape(chunks, acc_rows, LANES).sum(axis=0)
        else:
            lin = p * steps + s                         # linear block index
            is_tail = (lin + 1) * block_elems > n_valid

            @pl.when(jnp.logical_not(is_tail))
            def _():
                acc_ref[...] += val.reshape(chunks, acc_rows, LANES).sum(axis=0)

            @pl.when(is_tail)
            def _():
                row = jax.lax.broadcasted_iota(jnp.int32, (tile_m, LANES), 0)
                col = jax.lax.broadcasted_iota(jnp.int32, (tile_m, LANES), 1)
                flat = (lin * tile_m + row) * LANES + col
                masked = jnp.where(flat < n_valid, val, 0.0)
                acc_ref[...] += masked.reshape(chunks, acc_rows, LANES).sum(axis=0)

        @pl.when(s == steps - 1)
        def _():
            # Store the small accumulator directly (lane-dense); final reduce in XLA.
            out_ref[...] = acc_ref[...].reshape(1, acc_rows, LANES)

    return kernel


def _charbonnier_sum_aligned(x2, y2):
    """Sum of sqrt((x - y)^2 + eps^2) over a (m, 128) pair. Returns f32 scalar."""
    m = x2.shape[0]
    n_valid = m * LANES
    # In-kernel tail-mask index math is int32.
    assert n_valid < 2 ** 31, "tensor too large for int32 in-kernel index math"

    tile_m = min(TILE_M_MAX, m)             # == m (full dim) or a multiple of 8
    acc_rows = _pick_acc_rows(tile_m)
    num_blocks = pl.cdiv(m, tile_m)
    num_partials = (NUM_PARTIALS
                    if num_blocks >= NUM_PARTIALS and num_blocks % NUM_PARTIALS == 0
                    else 1)
    steps = num_blocks // num_partials
    # Only the last block can overhang past m rows; mask exactly in-kernel.
    needs_mask = (num_partials * steps * tile_m) != m

    in_map = lambda p, s: (p * steps + s, 0)
    kernel = _make_kernel(tile_m, acc_rows, steps, n_valid, needs_mask)

    itemsize = x2.dtype.itemsize
    cost = pl.CostEstimate(
        flops=5 * n_valid,
        transcendentals=n_valid,
        bytes_accessed=2 * n_valid * itemsize + num_partials * acc_rows * LANES * 4,
    )

    partials = pl.pallas_call(
        kernel,
        out_shape=jax.ShapeDtypeStruct((num_partials, acc_rows, LANES), jnp.float32),
        grid_spec=pltpu.PrefetchScalarGridSpec(
            num_scalar_prefetch=0,
            grid=(num_partials, steps),
            in_specs=[
                pl.BlockSpec((tile_m, LANES), in_map),
                pl.BlockSpec((tile_m, LANES), in_map),
            ],
            out_specs=pl.BlockSpec((1, acc_rows, LANES), lambda p, s: (p, 0, 0)),
            scratch_shapes=[pltpu.VMEM((acc_rows, LANES), jnp.float32)],
        ),
        compiler_params=pltpu.CompilerParams(
            dimension_semantics=("parallel", "arbitrary"),
            vmem_limit_bytes=32 * 1024 * 1024,
        ),
        cost_estimate=cost,
    )(x2, y2)

    return jnp.sum(partials)


@jax.jit
def charbonnier_loss(x, y):
    """Charbonnier loss: mean(sqrt((x - y)^2 + eps^2)). Returns a scalar f32."""
    assert x.shape == y.shape
    n = x.size
    assert n > 0
    eps2 = float(EPS) * float(EPS)

    xf = x.reshape(-1)
    yf = y.reshape(-1)

    n_main = (n // LANES) * LANES            # 128-aligned prefix handled by the kernel
    total = jnp.float32(0.0)

    if n_main > 0:
        m = n_main // LANES
        x2 = xf[:n_main].reshape(m, LANES)
        y2 = yf[:n_main].reshape(m, LANES)
        total = total + _charbonnier_sum_aligned(x2, y2)

    if n_main != n:
        # < 128-element tail for 128-misaligned sizes: trivially summed in XLA,
        # avoids re-materializing the whole tensors with jnp.pad.
        tx = xf[n_main:].astype(jnp.float32)
        ty = yf[n_main:].astype(jnp.float32)
        dt = tx - ty
        total = total + jnp.sum(jnp.sqrt(dt * dt + eps2))

    return total / jnp.float32(n)


if __name__ == "__main__":
    key = jax.random.PRNGKey(0)

    def ref_loss(a, b):
        d = a.astype(jnp.float32) - b.astype(jnp.float32)
        return jnp.mean(jnp.sqrt(d * d + jnp.float32(EPS * EPS)))

    checks = [
        (2, 4, 16, 16),     # primary: aligned fast path, single block
        (2, 3, 17, 19),     # 128-misaligned: wrapper tail + full-dim block
        (1, 8, 320, 256),   # multi-block + partials axis + overhang mask
        (2, 4, 512, 512),   # multi-step accumulation (steps > 1), no mask
    ]
    for i, shape in enumerate(checks):
        kx, ky = jax.random.split(jax.random.fold_in(key, i))
        xx = jax.random.normal(kx, shape, dtype=jnp.float32)
        yy = jax.random.normal(ky, shape, dtype=jnp.float32)
        loss = charbonnier_loss(xx, yy)
        jax.block_until_ready(loss)
        ref = ref_loss(xx, yy)
        assert jnp.allclose(loss, ref, rtol=1e-5, atol=1e-6), (shape, loss, ref)

    print("KERNEL_OK")
</pallas_src>

<mosaic_0001>
module attributes {stable_mosaic.version = 11 : i64} {
  func.func @kernel(%arg0: i32, %arg1: i32, %arg2: memref<16x128xf32, #tpu.memory_space<vmem>>, %arg3: memref<16x128xf32, #tpu.memory_space<vmem>>, %arg4: memref<1x16x128xf32, #tpu.memory_space<vmem>>, %arg5: memref<16x128xf32, #tpu.memory_space<vmem>>) attributes {dimension_semantics = [#tpu.dimension_semantics<parallel>, #tpu.dimension_semantics<arbitrary>], iteration_bounds = array<i64: 1, 1>, scalar_prefetch = 0 : i64, scratch_operands = 1 : i64, tpu.core_type = #tpu.core_type<tc>, window_params = [{transform_indices = @transform_0, window_bounds = array<i64: 16, 128>}, {transform_indices = @transform_1, window_bounds = array<i64: 16, 128>}, {transform_indices = @transform_2, window_bounds = array<i64: 1, 16, 128>}]} {
    %c0_i32 = arith.constant 0 : i32
    %0 = arith.cmpi eq, %arg1, %c0_i32 : i32
    %1 = arith.extui %0 : i1 to i32
    %c0_i32_0 = arith.constant 0 : i32
    %2 = arith.cmpi ne, %1, %c0_i32_0 : i32
    scf.if %2 {
      %cst_11 = arith.constant 0.000000e+00 : f32
      %18 = vector.broadcast %cst_11 : f32 to vector<16x128xf32>
      %c0_12 = arith.constant 0 : index
      %c0_13 = arith.constant 0 : index
      %19 = vector.load %arg5[%c0_12, %c0_13] : memref<16x128xf32, #tpu.memory_space<vmem>>, vector<16x128xf32>
      tpu.vector_store %arg5[%c0_12, %c0_13], %18 {strides = array<i32>} : memref<16x128xf32, #tpu.memory_space<vmem>>, vector<16x128xf32>,
    } else {
    }
    %c0 = arith.constant 0 : index
    %c0_1 = arith.constant 0 : index
    %3 = vector.load %arg2[%c0, %c0_1] : memref<16x128xf32, #tpu.memory_space<vmem>>, vector<16x128xf32>
    %c0_2 = arith.constant 0 : index
    %c0_3 = arith.constant 0 : index
    %4 = vector.load %arg3[%c0_2, %c0_3] : memref<16x128xf32, #tpu.memory_space<vmem>>, vector<16x128xf32>
    %5 = arith.subf %3, %4 : vector<16x128xf32>
    %6 = arith.mulf %5, %5 : vector<16x128xf32>
    %cst = arith.constant 9.99999997E-7 : f32
    %7 = vector.broadcast %cst : f32 to vector<16x128xf32>
    %8 = arith.addf %6, %7 : vector<16x128xf32>
    %9 = math.sqrt %8 : vector<16x128xf32>
    %c0_4 = arith.constant 0 : index
    %c0_5 = arith.constant 0 : index
    %10 = vector.load %arg5[%c0_4, %c0_5] : memref<16x128xf32, #tpu.memory_space<vmem>>, vector<16x128xf32>
    %11 = vector.shape_cast %9 : vector<16x128xf32> to vector<1x16x128xf32>
    %cst_6 = arith.constant dense<0.000000e+00> : vector<16x128xf32>
    %12 = vector.multi_reduction <add>, %11, %cst_6 [0] : vector<1x16x128xf32> to vector<16x128xf32>
    %13 = arith.addf %10, %12 : vector<16x128xf32>
    %c0_7 = arith.constant 0 : index
    %c0_8 = arith.constant 0 : index
    %14 = vector.load %arg5[%c0_7, %c0_8] : memref<16x128xf32, #tpu.memory_space<vmem>>, vector<16x128xf32>
    tpu.vector_store %arg5[%c0_7, %c0_8], %13 {strides = array<i32>} : memref<16x128xf32, #tpu.memory_space<vmem>>, vector<16x128xf32>,
    %c0_i32_9 = arith.constant 0 : i32
    %15 = arith.cmpi eq, %arg1, %c0_i32_9 : i32
    %16 = arith.extui %15 : i1 to i32
    %c0_i32_10 = arith.constant 0 : i32
    %17 = arith.cmpi ne, %16, %c0_i32_10 : i32
    scf.if %17 {
      %c0_11 = arith.constant 0 : index
      %c0_12 = arith.constant 0 : index
      %18 = vector.load %arg5[%c0_11, %c0_12] : memref<16x128xf32, #tpu.memory_space<vmem>>, vector<16x128xf32>
      %19 = vector.shape_cast %18 : vector<16x128xf32> to vector<1x16x128xf32>
      %c0_13 = arith.constant 0 : index
      %c0_14 = arith.constant 0 : index
      %c0_15 = arith.constant 0 : index
      %20 = vector.load %arg4[%c0_13, %c0_14, %c0_15] : memref<1x16x128xf32, #tpu.memory_space<vmem>>, vector<1x16x128xf32>
      tpu.vector_store %arg4[%c0_13, %c0_14, %c0_15], %19 {strides = array<i32>} : memref<1x16x128xf32, #tpu.memory_space<vmem>>, vector<1x16x128xf32>,
    } else {
    }
    return
  }
  func.func @transform_0(%arg0: i32, %arg1: i32) -> (i32, i32) {
    %c1_i32 = arith.constant 1 : i32
    %0 = arith.muli %arg0, %c1_i32 : i32
    %1 = arith.addi %0, %arg1 : i32
    %c0_i32 = arith.constant 0 : i32
    %c0_i32_0 = arith.constant 0 : i32
    return %1, %c0_i32 : i32, i32
  }
  func.func @transform_1(%arg0: i32, %arg1: i32) -> (i32, i32) {
    %c1_i32 = arith.constant 1 : i32
    %0 = arith.muli %arg0, %c1_i32 : i32
    %1 = arith.addi %0, %arg1 : i32
    %c0_i32 = arith.constant 0 : i32
    %c0_i32_0 = arith.constant 0 : i32
    return %1, %c0_i32 : i32, i32
  }
  func.func @transform_2(%arg0: i32, %arg1: i32) -> (i32, i32, i32) {
    %c0_i32 = arith.constant 0 : i32
    %c0_i32_0 = arith.constant 0 : i32
    %c0_i32_1 = arith.constant 0 : i32
    return %arg0, %c0_i32, %c0_i32_0 : i32, i32, i32
  }
}

</mosaic_0001>

<bundles_post_ra>
// kernel: charbonnier_loss.1
= control target key start
LH: loop header
LB: loop body
LE: loop exit
PB: predicated region body
PF: predicated region fallthrough
CT: control target
= control target key end

     0   :  { %s153_s0 = inlined_call_operand.vmem [shape: f32[16,128], index: 0, kind: input, shape index: {}]   ;;  %s154_s1 = inlined_call_operand.vmem [shape: f32[16,128], index: 1, kind: input, shape index: {}]   ;;  %s155_s2 = inlined_call_operand.vmem [shape: f32[1,16,128], index: 2, kind: output, shape index: {}]  }
   0x1   :  { %v61_v0 = vld [vmem:[%s153_s0] sm:$0xff]  ;;  %v62_v2 = vld [vmem:[%s153_s0 + $0x8] sm:$0xff] }
   0x2   :  { %v63_v1 = vld [vmem:[%s154_s1] sm:$0xff]  ;;  %v64_v4 = vld [vmem:[%s154_s1 + $0x8] sm:$0xff] }
   0x3   :  { %v65_v3 = vsub.f32 %v61_v0, %v63_v1  ;;  %v66_v5 = vsub.f32 %v62_v2, %v64_v4 }
   0x5   :  { %v67_v6 = vmul.f32 %v65_v3, %v65_v3  ;;  %v68_v7 = vmul.f32 %v66_v5, %v66_v5 }
   0x7   :  { %v69_v8 = vadd.f32 1e-06, %v67_v6  ;;  %v70_v9 = vadd.f32 1e-06, %v68_v7 }
   0x9   :  { %116 = vrsqrt.f32 %v69_v8  ;;  %vm73_vm0 = vcmp.eq.f32.partialorder %v69_v8, inf  ;;  %v76_v11 = vand.u32 2147483648, %v69_v8  ;;  %vm75_vm1 = vcmp.eq.f32.partialorder %v69_v8, 0.0 }
   0xa   :  { %118 = vrsqrt.f32 %v70_v9  ;;  %vm80_vm2 = vcmp.eq.f32.partialorder %v70_v9, inf  ;;  %v83_v14 = vand.u32 2147483648, %v70_v9  ;;  %vm82_vm3 = vcmp.eq.f32.partialorder %v70_v9, 0.0 }
  0x13   :  { %v117_v10 = vpop.eup %116 }
  0x14   :  { %v119_v12 = vpop.eup %118  ;;  %v72_v13 = vmul.f32 %v117_v10, %v69_v8 }
  0x15   :  { %v79_v15 = vmul.f32 %v119_v12, %v70_v9 }
  0x16   :  { %v74_v16 = vsel %vm73_vm0, %v69_v8, %v72_v13 }
  0x17   :  { %v77_v17 = vsel %vm75_vm1, %v76_v11, %v74_v16  ;;  %v81_v18 = vsel %vm80_vm2, %v70_v9, %v79_v15 }
  0x18   :  { %98 = vst [vmem:[%s155_s2] sm:$0xff] %v77_v17  ;;  %v84_v19 = vsel %vm82_vm3, %v83_v14, %v81_v18 }
  0x19   :  { %99 = vst [vmem:[%s155_s2 + $0x8] sm:$0xff] %v84_v19 }

</bundles_post_ra>
